<compile_context>
chip_gen: v7x
topology: tpu7x:2x2x1
jax: 0.10.0
libtpu: 0.0.40
codegen_flags: <defaults>
</compile_context>

<pallas_src>
import functools

import jax
import jax.numpy as jnp
from jax.experimental import pallas as pl
from jax.experimental.pallas import tpu as pltpu

LANES = 128
# Per-step tile height (sweep 2048/4096/8192 if tuning further). 4096x128 f32
# = 2 MiB per input; 2 inputs x 2 pipeline buffers = 8 MiB VMEM, inside the
# default scoped limit on v5e (16 MiB) and v6e/v7x (32 MiB).
BLOCK_ROWS = 4096


def _bce_loss(x, t, weight):
    # Exact semantics of the torch module: clamp(log2(sigmoid(x)), -100, 100).
    # NOTE: intentionally NOT rewritten via log-sigmoid / log2 identities --
    # that would change results for saturated logits (|x| > ~17) vs. the
    # module's clamp-after-saturation behavior.
    # The +100 upper clamp is mathematically dead (log2(p) <= 0 for p in
    # [0,1]), so only the lower clamp is emitted.
    s = jax.nn.sigmoid(x)
    logx = jnp.maximum(jnp.log2(s), -100.0)
    loginvx = jnp.maximum(jnp.log2(1.0 - s), -100.0)
    return -weight * (t * logx + (1.0 - t) * loginvx)


def _bce_sum_kernel(x_ref, t_ref, o_ref, acc_ref, *, weight, acc_rows,
                    full_blocks, ragged_rows):
    c = pl.program_id(0)            # split (TensorCore) index -- "parallel"
    i = pl.program_id(1)            # reduction step within split -- "arbitrary"
    nblk_inner = pl.num_programs(1)
    gid = c * nblk_inner + i        # global block id along the row axis

    @pl.when(i == 0)
    def _():
        acc_ref[...] = jnp.zeros_like(acc_ref)

    x = x_ref[...].astype(jnp.float32)
    t = t_ref[...].astype(jnp.float32)
    loss = _bce_loss(x, t, weight)

    def _partial(v):
        # Collapse (block_rows, 128) -> (acc_rows, 128) with plain VPU adds;
        # the accumulator stays vreg-shaped so the expensive cross-lane/
        # cross-sublane reduce happens exactly once, in the finalize step.
        # TODO(synk): confirm via bundle dump that this reshape stays a
        # layout-preserving vreg regroup (it splits the sublane axis in
        # multiples of 8, so no relayout is expected).
        if acc_rows == 8:
            return v.reshape(-1, 8, LANES).sum(axis=0)
        return v.sum(axis=0, keepdims=True)

    # Fully in-bounds blocks: unmasked accumulation (hot path).
    @pl.when(gid < full_blocks)
    def _():
        acc_ref[...] += _partial(loss)

    if ragged_rows > 0:
        # Exactly one block straddles the end of the slab; mask with a select
        # (NOT a multiply) so NaN/Inf from garbage rows cannot leak in.
        @pl.when(gid == full_blocks)
        def _():
            row_ids = jax.lax.broadcasted_iota(jnp.int32, loss.shape, 0)
            masked = jnp.where(row_ids < ragged_rows, loss, 0.0)
            acc_ref[...] += _partial(masked)

    # Blocks with gid > full_blocks (only possible padding blocks of the
    # 2-way split) contribute nothing.

    @pl.when(i == nblk_inner - 1)
    def _():
        # Single final cross-lane/sublane reduce to this split's (1,1) partial.
        o_ref[...] = jnp.sum(acc_ref[...], keepdims=True)


def _bce_bulk_sum(x2, t2, weight, block_rows_cap=BLOCK_ROWS):
    """Sum of the BCE loss over a (rows, 128) lane-dense slab via Pallas."""
    rows = x2.shape[0]
    block_rows = rows if rows <= block_rows_cap else block_rows_cap
    total_blocks = pl.cdiv(rows, block_rows)
    full_blocks = rows // block_rows
    ragged_rows = rows - full_blocks * block_rows

    # Shard the reduction across (up to) 2 TensorCores when there is more than
    # one block of work; on single-TC chips this is just a sequential loop.
    num_splits = 2 if total_blocks > 1 else 1
    nblk_inner = pl.cdiv(total_blocks, num_splits)
    last_block = total_blocks - 1
    acc_rows = 8 if block_rows % 8 == 0 else 1

    def in_map(c, i):
        # Clamp so padding grid points (when total_blocks is odd) re-read the
        # last valid block instead of issuing an out-of-bounds DMA; the kernel
        # never accumulates those steps.
        return (jnp.minimum(c * nblk_inner + i, last_block), 0)

    kernel = functools.partial(
        _bce_sum_kernel,
        weight=float(weight),
        acc_rows=acc_rows,
        full_blocks=full_blocks,
        ragged_rows=ragged_rows,
    )

    out = pl.pallas_call(
        kernel,
        out_shape=jax.ShapeDtypeStruct((num_splits, 1), jnp.float32),
        grid_spec=pltpu.PrefetchScalarGridSpec(
            num_scalar_prefetch=0,
            grid=(num_splits, nblk_inner),
            in_specs=[
                pl.BlockSpec((block_rows, LANES), in_map),
                pl.BlockSpec((block_rows, LANES), in_map),
            ],
            out_specs=pl.BlockSpec((1, 1), lambda c, i: (c, 0)),
            scratch_shapes=[pltpu.VMEM((acc_rows, LANES), jnp.float32)],
        ),
        compiler_params=pltpu.CompilerParams(
            dimension_semantics=("parallel", "arbitrary"),
        ),
    )(x2, t2)
    # Sum the (<= 2) per-split partials in the wrapper.
    return jnp.sum(out)


def custom_bce_with_logits_loss(inputs, targets, weight=1.0, reduction="mean",
                                block_rows=BLOCK_ROWS):
    """Pallas TPU implementation of CustomBCEWithLogitsLoss.forward."""
    x = inputs.reshape(-1)
    t = targets.reshape(-1)
    n = x.shape[0]
    rows = n // LANES
    n_bulk = rows * LANES

    total = jnp.zeros((), jnp.float32)
    if rows > 0:
        # No wrapper-side dtype cast: narrow inputs (bf16 etc.) stream to the
        # kernel as-is and are upcast in-register.
        x2 = x[:n_bulk].reshape(rows, LANES)
        t2 = t[:n_bulk].reshape(rows, LANES)
        total = total + _bce_bulk_sum(x2, t2, weight, block_rows)
    if n_bulk < n:
        # Sub-128-lane tail: < 128 elements, handled by one fused XLA op.
        xt = x[n_bulk:].astype(jnp.float32)
        tt = t[n_bulk:].astype(jnp.float32)
        total = total + jnp.sum(_bce_loss(xt, tt, float(weight)))

    if reduction == "mean":
        return total * (1.0 / n)
    elif reduction == "sum":
        return total
    # TODO(synk): other reduction modes fall through (torch module returns None).
    return None


def _reference(inputs, targets, weight=1.0, reduction="mean"):
    x = inputs.reshape(-1).astype(jnp.float32)
    t = targets.reshape(-1).astype(jnp.float32)
    loss = _bce_loss(x, t, float(weight))
    return loss.mean() if reduction == "mean" else loss.sum()


if __name__ == "__main__":
    key = jax.random.PRNGKey(0)

    # Shapes consistent with a segmentation-style logit map: (N, C, H, W).
    # (shape, reduction, dtype, block_rows override to exercise multi-block /
    #  dual-split / ragged paths at small sizes)
    cases = [
        ((2, 4, 16, 16), "mean", jnp.float32, BLOCK_ROWS),  # single-block path
        ((4, 8, 64, 65), "mean", jnp.float32, 256),          # multi-block + 2-way split + ragged
        ((2, 3, 5, 7), "sum", jnp.float32, BLOCK_ROWS),      # tiny + sub-128-lane tail
        ((2, 4, 16, 16), "mean", jnp.bfloat16, BLOCK_ROWS),  # narrow-dtype pass-through
    ]
    for shape, reduction, dtype, br in cases:
        k1, k2, key = jax.random.split(key, 3)
        x = jax.random.normal(k1, shape, dtype=jnp.float32).astype(dtype)
        t = (jax.random.uniform(k2, shape) > 0.5).astype(dtype)

        out = custom_bce_with_logits_loss(x, t, weight=1.0, reduction=reduction,
                                          block_rows=br)
        out = jax.block_until_ready(out)

        ref = _reference(x, t, weight=1.0, reduction=reduction)
        assert jnp.allclose(out, ref, rtol=1e-4, atol=1e-5), (shape, out, ref)

    print("KERNEL_OK")
</pallas_src>

<mosaic_0001>
module attributes {stable_mosaic.version = 11 : i64} {
  func.func @_bce_sum_kernel(%arg0: i32, %arg1: i32, %arg2: memref<16x128xf32, #tpu.memory_space<vmem>>, %arg3: memref<16x128xf32, #tpu.memory_space<vmem>>, %arg4: memref<1x1xf32, #tpu.memory_space<vmem>>, %arg5: memref<8x128xf32, #tpu.memory_space<vmem>>) attributes {dimension_semantics = [#tpu.dimension_semantics<parallel>, #tpu.dimension_semantics<arbitrary>], iteration_bounds = array<i64: 1, 1>, scalar_prefetch = 0 : i64, scratch_operands = 1 : i64, tpu.core_type = #tpu.core_type<tc>, window_params = [{transform_indices = @transform_0, window_bounds = array<i64: 16, 128>}, {transform_indices = @transform_1, window_bounds = array<i64: 16, 128>}, {transform_indices = @transform_2, window_bounds = array<i64: 1, 1>}]} {
    %c1_i32 = arith.constant 1 : i32
    %0 = arith.muli %arg0, %c1_i32 : i32
    %1 = arith.addi %0, %arg1 : i32
    %c0_i32 = arith.constant 0 : i32
    %2 = arith.cmpi eq, %arg1, %c0_i32 : i32
    %3 = arith.extui %2 : i1 to i32
    %c0_i32_0 = arith.constant 0 : i32
    %4 = arith.cmpi ne, %3, %c0_i32_0 : i32
    scf.if %4 {
      %cst_15 = arith.constant 0.000000e+00 : f32
      %39 = vector.broadcast %cst_15 : f32 to vector<8x128xf32>
      %c0_16 = arith.constant 0 : index
      %c0_17 = arith.constant 0 : index
      %40 = vector.load %arg5[%c0_16, %c0_17] : memref<8x128xf32, #tpu.memory_space<vmem>>, vector<8x128xf32>
      tpu.vector_store %arg5[%c0_16, %c0_17], %39 {strides = array<i32>} : memref<8x128xf32, #tpu.memory_space<vmem>>, vector<8x128xf32>,
    } else {
    }
    %c0 = arith.constant 0 : index
    %c0_1 = arith.constant 0 : index
    %5 = vector.load %arg2[%c0, %c0_1] : memref<16x128xf32, #tpu.memory_space<vmem>>, vector<16x128xf32>
    %c0_2 = arith.constant 0 : index
    %c0_3 = arith.constant 0 : index
    %6 = vector.load %arg3[%c0_2, %c0_3] : memref<16x128xf32, #tpu.memory_space<vmem>>, vector<16x128xf32>
    %7 = arith.negf %5 : vector<16x128xf32>
    %8 = math.exp %7 : vector<16x128xf32>
    %cst = arith.constant 1.000000e+00 : f32
    %9 = vector.broadcast %cst : f32 to vector<16x128xf32>
    %10 = arith.addf %9, %8 : vector<16x128xf32>
    %11 = arith.divf %9, %10 : vector<16x128xf32>
    %12 = math.log %11 : vector<16x128xf32>
    %cst_4 = arith.constant 2.000000e+00 : f32
    %13 = math.log %cst_4 : f32
    %14 = vector.broadcast %13 : f32 to vector<16x128xf32>
    %15 = arith.divf %12, %14 : vector<16x128xf32>
    %cst_5 = arith.constant -1.000000e+02 : f32
    %16 = vector.broadcast %cst_5 : f32 to vector<16x128xf32>
    %17 = arith.maximumf %15, %16 : vector<16x128xf32>
    %cst_6 = arith.constant 1.000000e+00 : f32
    %18 = vector.broadcast %cst_6 : f32 to vector<16x128xf32>
    %19 = arith.subf %18, %11 : vector<16x128xf32>
    %20 = math.log %19 : vector<16x128xf32>
    %cst_7 = arith.constant 2.000000e+00 : f32
    %21 = math.log %cst_7 : f32
    %22 = vector.broadcast %21 : f32 to vector<16x128xf32>
    %23 = arith.divf %20, %22 : vector<16x128xf32>
    %cst_8 = arith.constant -1.000000e+02 : f32
    %24 = vector.broadcast %cst_8 : f32 to vector<16x128xf32>
    %25 = arith.maximumf %23, %24 : vector<16x128xf32>
    %26 = arith.mulf %6, %17 : vector<16x128xf32>
    %cst_9 = arith.constant 1.000000e+00 : f32
    %27 = vector.broadcast %cst_9 : f32 to vector<16x128xf32>
    %28 = arith.subf %27, %6 : vector<16x128xf32>
    %29 = arith.mulf %28, %25 : vector<16x128xf32>
    %30 = arith.addf %26, %29 : vector<16x128xf32>
    %cst_10 = arith.constant -1.000000e+00 : f32
    %31 = vector.broadcast %cst_10 : f32 to vector<16x128xf32>
    %32 = arith.mulf %31, %30 : vector<16x128xf32>
    %c1_i32_11 = arith.constant 1 : i32
    %33 = arith.cmpi slt, %1, %c1_i32_11 : i32
    %34 = arith.extui %33 : i1 to i32
    %c0_i32_12 = arith.constant 0 : i32
    %35 = arith.cmpi ne, %34, %c0_i32_12 : i32
    scf.if %35 {
      %c0_15 = arith.constant 0 : index
      %c0_16 = arith.constant 0 : index
      %39 = vector.load %arg5[%c0_15, %c0_16] : memref<8x128xf32, #tpu.memory_space<vmem>>, vector<8x128xf32>
      %40 = vector.shape_cast %32 : vector<16x128xf32> to vector<2x8x128xf32>
      %cst_17 = arith.constant dense<0.000000e+00> : vector<8x128xf32>
      %41 = vector.multi_reduction <add>, %40, %cst_17 [0] : vector<2x8x128xf32> to vector<8x128xf32>
      %42 = arith.addf %39, %41 : vector<8x128xf32>
      %c0_18 = arith.constant 0 : index
      %c0_19 = arith.constant 0 : index
      %43 = vector.load %arg5[%c0_18, %c0_19] : memref<8x128xf32, #tpu.memory_space<vmem>>, vector<8x128xf32>
      tpu.vector_store %arg5[%c0_18, %c0_19], %42 {strides = array<i32>} : memref<8x128xf32, #tpu.memory_space<vmem>>, vector<8x128xf32>,
    } else {
    }
    %c0_i32_13 = arith.constant 0 : i32
    %36 = arith.cmpi eq, %arg1, %c0_i32_13 : i32
    %37 = arith.extui %36 : i1 to i32
    %c0_i32_14 = arith.constant 0 : i32
    %38 = arith.cmpi ne, %37, %c0_i32_14 : i32
    scf.if %38 {
      %c0_15 = arith.constant 0 : index
      %c0_16 = arith.constant 0 : index
      %39 = vector.load %arg5[%c0_15, %c0_16] : memref<8x128xf32, #tpu.memory_space<vmem>>, vector<8x128xf32>
      %40 = vector.shape_cast %39 : vector<8x128xf32> to vector<1x8x128xf32>
      %cst_17 = arith.constant dense<0.000000e+00> : vector<1xf32>
      %41 = vector.multi_reduction <add>, %40, %cst_17 [1, 2] : vector<1x8x128xf32> to vector<1xf32>
      %42 = vector.shape_cast %41 : vector<1xf32> to vector<1x1x1xf32>
      %43 = vector.extract %42[0, 0, 0] : f32 from vector<1x1x1xf32>
      %44 = vector.broadcast %43 : f32 to vector<1x1xf32>
      %c0_18 = arith.constant 0 : index
      %c0_19 = arith.constant 0 : index
      %45 = vector.load %arg4[%c0_18, %c0_19] : memref<1x1xf32, #tpu.memory_space<vmem>>, vector<1x1xf32>
      tpu.vector_store %arg4[%c0_18, %c0_19], %44 {strides = array<i32>} : memref<1x1xf32, #tpu.memory_space<vmem>>, vector<1x1xf32>,
    } else {
    }
    return
  }
  func.func @transform_0(%arg0: i32, %arg1: i32) -> (i32, i32) {
    %c1_i32 = arith.constant 1 : i32
    %0 = arith.muli %arg0, %c1_i32 : i32
    %1 = arith.addi %0, %arg1 : i32
    %c0_i32 = arith.constant 0 : i32
    %2 = arith.minsi %1, %c0_i32 : i32
    %c0_i32_0 = arith.constant 0 : i32
    %c0_i32_1 = arith.constant 0 : i32
    return %2, %c0_i32_0 : i32, i32
  }
  func.func @transform_1(%arg0: i32, %arg1: i32) -> (i32, i32) {
    %c1_i32 = arith.constant 1 : i32
    %0 = arith.muli %arg0, %c1_i32 : i32
    %1 = arith.addi %0, %arg1 : i32
    %c0_i32 = arith.constant 0 : i32
    %2 = arith.minsi %1, %c0_i32 : i32
    %c0_i32_0 = arith.constant 0 : i32
    %c0_i32_1 = arith.constant 0 : i32
    return %2, %c0_i32_0 : i32, i32
  }
  func.func @transform_2(%arg0: i32, %arg1: i32) -> (i32, i32) {
    %c0_i32 = arith.constant 0 : i32
    %c0_i32_0 = arith.constant 0 : i32
    return %arg0, %c0_i32 : i32, i32
  }
}

</mosaic_0001>

<bundles_post_ra>
// kernel: tpu_custom_call.1
= control target key start
LH: loop header
LB: loop body
LE: loop exit
PB: predicated region body
PF: predicated region fallthrough
CT: control target
= control target key end

     0   :  { %7 = vsyncpa [#allocation4], 0  ;;  %s308_s0 = inlined_call_operand.hbm [shape: f32[16,128], index: 0, kind: input, shape index: {}]   ;;  %s309_s1 = inlined_call_operand.hbm [shape: f32[16,128], index: 1, kind: input, shape index: {}]   ;;  %s310_s2 = inlined_call_operand.hbm [shape: f32[1,1], index: 2, kind: output, shape index: {}]  }
   0x1   :  { %8 = vsyncpa [#allocation7], 0 }
   0x2   :  { %9 = vsyncpa [#allocation5], 0  ;;  %s252_s9 = smov [#allocation3]   ;;  %s180_s13 = scalar_lea.hbm %s308_s0, 256 }
   0x3   :  { %s21_s10 = sshll.u32 %s252_s9, 4  ;;  %p181_p0 = scmp.ne.s32.totalorder %s308_s0, %s180_s13  ;;  %s22_s10 = int_to_ptr.vmem [resolvable:$true] %s21_s10 }
   0x4   :  { %p184_p1 = scmp.lt.u32.totalorder %s180_s13, %s308_s0 }
   0x6   :  { %p186_p2 = pnand %p184_p1, %p181_p0 }
   0x8   :  { %189 = shalt.err (!%p186_p2)
}
   0x9   :  { %s190_s18 = scalar_lea.vmem %s22_s10, 256  ;;  %p195_p4 = scmp.lt.s32.totalorder %s22_s10, %s22_s10 }
   0xa   :  { %p191_p3 = scmp.ne.s32.totalorder %s22_s10, %s190_s18  ;;  %p196_p5 = scmp.lt.s32.totalorder %s190_s18, %s190_s18 }
   0xc   :  { %p197_p6 = por %p196_p5, %p195_p4 }
   0xe   :  { %p198_p7 = pnand %p197_p6, %p191_p3 }
  0x10   :  { %201 = shalt.err (!%p198_p7)
}
  0x11   :  { %s253_s19 = smov 128   ;;  %s254_s20 = smov 8  }
  0x12   :  { %27 = dma.hbm_to_vmem [thread:$0]  %s308_s0, 256, %s22_s10, [#allocation4], %s253_s19, %s253_s19, %s254_s20  }
  0x13   :  { %s255_s23 = smov [#allocation6]   ;;  %s202_s27 = scalar_lea.hbm %s309_s1, 256 }
  0x14   :  { %s39_s24 = sshll.u32 %s255_s23, 4  ;;  %p203_p8 = scmp.ne.s32.totalorder %s309_s1, %s202_s27  ;;  %s40_s24 = int_to_ptr.vmem [resolvable:$true] %s39_s24 }
  0x15   :  { %p206_p9 = scmp.lt.u32.totalorder %s202_s27, %s309_s1 }
  0x17   :  { %p208_p10 = pnand %p206_p9, %p203_p8 }
  0x19   :  { %211 = shalt.err (!%p208_p10)
}
  0x1a   :  { %s212_s4 = scalar_lea.vmem %s40_s24, 256  ;;  %p217_p12 = scmp.lt.s32.totalorder %s40_s24, %s40_s24 }
  0x1b   :  { %p213_p11 = scmp.ne.s32.totalorder %s40_s24, %s212_s4  ;;  %p218_p13 = scmp.lt.s32.totalorder %s212_s4, %s212_s4 }
  0x1d   :  { %p219_p0 = por %p218_p13, %p217_p12 }
  0x1f   :  { %p220_p1 = pnand %p219_p0, %p213_p11 }
  0x21   :  { %223 = shalt.err (!%p220_p1)
}
  0x22   :  { %45 = dma.hbm_to_vmem [thread:$0]  %s309_s1, 256, %s40_s24, [#allocation7], %s253_s19, %s253_s19, %s254_s20  }
  0x23   :  { %246 = dma.done.wait [#allocation4], 256  }
  0x24   :  { %247 = vsyncadd [#allocation4], 4294967040 }
  0x25   :  { %248 = dma.done.wait [#allocation7], 256  }
  0x26   :  { %249 = vsyncadd [#allocation7], 4294967040  ;;  %v66_v0 = vld [vmem:[#allocation3] sm:$0xff]  ;;  %v67_v1 = vld [vmem:[#allocation3 + $0x8] sm:$0xff]  ;;  %s256_s1 = smov [#allocation8]   ;;  %vm133_vm0 = vcmask 0  }
  0x27   :  { %v155_v2 = vmul.f32 -1.442695, %v66_v0  ;;  %v156_v3 = vmul.f32 -1.442695, %v67_v1  ;;  %v68_v16 = vld [vmem:[#allocation6] sm:$0xff]  ;;  %v69_v19 = vld [vmem:[#allocation6 + $0x8] sm:$0xff] }
  0x28   :  { %v103_v26 = vsub.f32 1.0, %v68_v16  ;;  %v104_v29 = vsub.f32 1.0, %v69_v19  ;;  %s141_s6 = sshll.u32 %s256_s1, 4  ;;  %s142_s6 = int_to_ptr.vmem [resolvable:$true] %s141_s6 }
  0x29   :  { %164 = vpow2.f32 %v155_v2  ;;  %s224_s8 = scalar_lea.vmem %s142_s6, 16  ;;  %s228_s9 = scalar_lea.vmem %s142_s6, 32 }
  0x2a   :  { %166 = vpow2.f32 %v156_v3  ;;  %p225_p2 = scmp.ne.s32.totalorder %s142_s6, %s224_s8  ;;  %p229_p3 = scmp.lt.s32.totalorder %s142_s6, %s142_s6 }
  0x2b   :  { %p230_p4 = scmp.lt.s32.totalorder %s228_s9, %s224_s8 }
  0x2d   :  { %p231_p5 = por %p230_p4, %p229_p3 }
  0x2f   :  { %p232_p6 = pnand %p231_p5, %p225_p2 }
  0x33   :  { %v165_v4 = vpop.eup %164 }
  0x34   :  { %v167_v5 = vpop.eup %166  ;;  %v76_v6 = vadd.f32 1.0, %v165_v4 }
  0x35   :  { %v77_v7 = vadd.f32 1.0, %v167_v5 }
  0x36   :  { %168 = vrcp.f32 %v76_v6 }
  0x37   :  { %170 = vrcp.f32 %v77_v7 }
  0x40   :  { %v169_v8 = vpop.eup %168 }
  0x41   :  { %v171_v9 = vpop.eup %170  ;;  %172 = vlog2.f32 %v169_v8  ;;  %v91_v10 = vsub.f32 1.0, %v169_v8 }
  0x42   :  { %174 = vlog2.f32 %v171_v9  ;;  %v92_v11 = vsub.f32 1.0, %v171_v9 }
  0x43   :  { %176 = vlog2.f32 %v91_v10 }
  0x44   :  { %178 = vlog2.f32 %v92_v11 }
  0x4b   :  { %v173_v12 = vpop.eup %172 }
  0x4c   :  { %v175_v13 = vpop.eup %174  ;;  %v83_v14 = vmul.f32 0.6931472, %v173_v12 }
  0x4d   :  { %v177_v15 = vpop.eup %176  ;;  %v85_v17 = vmul.f32 0.6931472, %v175_v13 }
  0x4e   :  { %v179_v18 = vpop.eup %178  ;;  %v87_v20 = vmul.f32 1.442695, %v83_v14  ;;  %v94_v21 = vmul.f32 0.6931472, %v177_v15 }
  0x4f   :  { %v88_v22 = vmul.f32 1.442695, %v85_v17  ;;  %v96_v23 = vmul.f32 0.6931472, %v179_v18 }
  0x50   :  { %v89_v24 = vmax.f32 %v87_v20, -100.0  ;;  %v97_v25 = vmul.f32 1.442695, %v94_v21 }
  0x51   :  { %v90_v27 = vmax.f32 %v88_v22, -100.0  ;;  %v98_v28 = vmul.f32 1.442695, %v96_v23 }
  0x52   :  { %v99_v30 = vmax.f32 %v97_v25, -100.0  ;;  %v101_v31 = vmul.f32 %v89_v24, %v68_v16 }
  0x53   :  { %v100_v32 = vmax.f32 %v98_v28, -100.0  ;;  %v102_v33 = vmul.f32 %v90_v27, %v69_v19 }
  0x54   :  { %v105_v34 = vmul.f32 %v103_v26, %v99_v30 }
  0x55   :  { %v106_v35 = vmul.f32 %v104_v29, %v100_v32 }
  0x56   :  { %v107_v36 = vadd.f32 %v105_v34, %v101_v31 }
  0x57   :  { %v108_v37 = vadd.f32 %v106_v35, %v102_v33 }
  0x58   :  { %v109_v38 = vmul.f32 -1.0, %v107_v36 }
  0x59   :  { %v110_v39 = vmul.f32 -1.0, %v108_v37 }
  0x5b   :  { %v116_v40 = vadd.f32 %v110_v39, %v109_v38 }
  0x5d   :  { %123 = vadd.xlane.f32.xlu0 %v116_v40 }
  0xea   :  { %v124_v41 = vpop.xlane.xlu0 %123 }
  0xeb   :  { %v125_v42 = vrot.slane %v124_v41, 4 }
  0xed   :  { %v126_v43 = vadd.f32 %v125_v42, %v124_v41 }
  0xef   :  { %v127_v44 = vrot.slane %v126_v43, 2 }
  0xf1   :  { %v128_v45 = vadd.f32 %v127_v44, %v126_v43 }
  0xf3   :  { %v129_v46 = vrot.slane %v128_v45, 1 }
  0xf5   :  { %v130_v47 = vadd.f32 %v129_v46, %v128_v45 }
  0xf7   :  { %157 = vpush %v130_v47 }
 0x128   :  { %s158_s7 = spop %157 }
 0x129   :  { %v132_v48 = vstv %s158_s7 }
 0x12a   :  { %134 = vst.msk [vmem:[#allocation8] sm:$0x1] %vm133_vm0, %v132_v48 }
 0x12b   :  { %235 = shalt.err (!%p232_p6)
}
 0x12c   :  { %s236_s12 = scalar_lea.hbm %s310_s2, 16 }
 0x12d   :  { %p237_p7 = scmp.ne.s32.totalorder %s310_s2, %s236_s12  ;;  %p240_p8 = scmp.lt.u32.totalorder %s236_s12, %s310_s2 }
 0x12f   :  { %p242_p9 = pnand %p240_p8, %p237_p7 }
 0x131   :  { %245 = shalt.err (!%p242_p9)
}
 0x132   :  { %144 = dma.vmem_to_hbm [thread:$0]  %s142_s6, 16, %s310_s2, [#allocation5]  }
 0x133   :  { %250 = dma.done.wait [#allocation5], 16  }
 0x134   :  { %251 = vsyncadd [#allocation5], 4294967280 }
 0x135   :  { %148 = vsyncpa [#allocation4], 1 }
 0x136   :  { %149 = vsyncpa [#allocation7], 1 }
 0x137   :  { %150 = vsyncpa [#allocation5], 1 }

</bundles_post_ra>
